<compile_context>
chip_gen: v7x
topology: tpu7x:2x2x1
jax: 0.10.0
libtpu: 0.0.40
codegen_flags: <defaults>
</compile_context>

<pallas_src>
import functools
import math

import jax
import jax.numpy as jnp
from jax.experimental import pallas as pl
from jax.experimental.pallas import tpu as pltpu


def _round_up(v, m):
    return ((v + m - 1) // m) * m


# ----------------------------------------------------------------------------- kernel

def _mlp_ln_act_kernel(x_ref, cond_ref, w_ref, wemb_ref, p_ref, o_ref, *,
                       condition_bias, eps):
    f32 = jnp.float32
    bf16 = jnp.bfloat16

    # conditioning path: silu(cond) @ W_emb  (SiLU in bf16; matmul in bf16, f32 acc)
    c = cond_ref[...].astype(bf16)
    c = c * jax.nn.sigmoid(c)
    c_emb = jnp.dot(c, wemb_ref[...], preferred_element_type=f32)

    # main linear: bf16 MXU operands, f32 accumulation
    h = jnp.dot(x_ref[...].astype(bf16), w_ref[...], preferred_element_type=f32)

    # resident (4, Cout) f32 parameter block: [b, b_emb, gamma, beta]
    p = p_ref[...]
    b, b_emb, gamma, beta = p[0:1], p[1:2], p[2:3], p[3:4]

    # bias + feature-wise modulation
    h = (h + b) * (condition_bias + (c_emb + b_emb))

    # fused LayerNorm: one read of h for both statistics, fold norm into the affine
    inv_n = 1.0 / float(h.shape[-1])
    mean = jnp.sum(h, axis=-1, keepdims=True) * inv_n
    var = jnp.sum(h * h, axis=-1, keepdims=True) * inv_n - mean * mean
    scale = gamma * jax.lax.rsqrt(var + eps)
    shift = beta - mean * scale
    h = h * scale + shift

    # activation (SiLU) in output precision; dropout p=0 -> Identity
    hb = h.astype(o_ref.dtype)
    o_ref[...] = hb * jax.nn.sigmoid(hb)


# ----------------------------------------------------------------------------- sizing

def _vmem_budget_bytes():
    """Usable scoped-VMEM budget for this kernel, per generation."""
    cap = 64 * 1024 * 1024  # conservative default (v7x per-core VMEM)
    try:
        info = pltpu.get_tpu_info()
        cap = int(getattr(info, "vmem_capacity_bytes", cap))
    except Exception:
        pass
    if cap <= 64 * 1024 * 1024:            # v7x-class part: leave headroom
        return max(cap - 8 * 1024 * 1024, 16 * 1024 * 1024)
    # v5e / v6e have 128 MiB physical: allow up to ~100 MiB
    return min(cap - 16 * 1024 * 1024, 100 * 1024 * 1024)


def _vmem_footprint_bytes(tm, cin, ccond, cout, x_bytes, cond_bytes, out_bytes):
    resident = 2 * cin * cout + 2 * ccond * cout + 4 * 4 * cout       # bf16 W, bf16 W_emb, f32 params (x1 buffer)
    streamed = 2 * tm * (cin * x_bytes + ccond * cond_bytes + cout * out_bytes)  # x2 buffers
    epilogue = 4 * tm * cout * 4                                      # f32 temporaries (h, scale, shift, ...)
    return resident + streamed + epilogue


def _pick_tm(B, cin, ccond, cout, x_bytes, cond_bytes, out_bytes, budget):
    if B <= 8:
        return B                                   # block == full array dim (always legal)
    tm = min(512, _round_up(B, 8))
    if pl.cdiv(B, tm) < 2:                         # >= 2 grid steps -> both v7x TCs get work
        tm = _round_up(pl.cdiv(B, 2), 8)
    while tm > 8 and _vmem_footprint_bytes(tm, cin, ccond, cout,
                                           x_bytes, cond_bytes, out_bytes) > budget:
        tm = max(8, _round_up(tm // 2, 8))
    # TODO(synk): for very large Cin*Cout on v7x (footprint > budget even at tm=8) a
    # K-split grid axis ("arbitrary") with an f32 accumulator scratch would be needed.
    return tm


# ----------------------------------------------------------------------------- wrapper

def prepare_params(params):
    """One-time parameter prep (cast weights to bf16, pack the 1-row params).

    Cache the result across calls so no per-call XLA cast/concat passes are paid.
    NOTE: LayerNorm statistics in the kernel assume no padded feature columns; feature
    dims are used as-is (no padding), so no masking is required.
    """
    w = params["w"].astype(jnp.bfloat16)          # (Cin, Cout)  == W^T
    w_emb = params["w_emb"].astype(jnp.bfloat16)  # (Ccond, Cout) == W_emb^T
    pvec = jnp.concatenate(
        [params["b"], params["b_emb"], params["gamma"], params["beta"]],
        axis=0).astype(jnp.float32)               # (4, Cout)
    return {"w": w, "w_emb": w_emb, "pvec": pvec}


def mlp_ln_act(x, cond, prep, *, condition_bias=1.0, eps=1e-5,
               out_dtype=jnp.bfloat16):
    """x: (B, Cin), cond: (B, Ccond) -> (B, Cout) in `out_dtype`. Single fused kernel."""
    B, Cin = x.shape
    Ccond = cond.shape[1]
    Cout = prep["w"].shape[1]

    x_bytes = jnp.dtype(x.dtype).itemsize
    cond_bytes = jnp.dtype(cond.dtype).itemsize
    out_bytes = jnp.dtype(out_dtype).itemsize

    budget = _vmem_budget_bytes()
    TM = _pick_tm(B, Cin, Ccond, Cout, x_bytes, cond_bytes, out_bytes, budget)
    grid = (pl.cdiv(B, TM),)

    stream = lambda shape: pl.BlockSpec(shape, lambda i: (i, 0))
    resident = lambda shape: pl.BlockSpec(shape, lambda i: (0, 0),
                                          pipeline_mode=pl.Buffered(1))

    kernel = functools.partial(_mlp_ln_act_kernel,
                               condition_bias=condition_bias, eps=eps)

    flops = 2 * B * (Cin + Ccond) * Cout
    transcendentals = B * (Ccond + Cout + 1)       # cond SiLU + out SiLU + rsqrt
    bytes_accessed = (B * Cin * x_bytes + B * Ccond * cond_bytes
                      + 2 * Cin * Cout + 2 * Ccond * Cout + 4 * 4 * Cout
                      + B * Cout * out_bytes)

    out = pl.pallas_call(
        kernel,
        out_shape=jax.ShapeDtypeStruct((B, Cout), out_dtype),
        grid=grid,
        in_specs=[
            stream((TM, Cin)),          # x tile     (pipelined, double-buffered)
            stream((TM, Ccond)),        # cond tile  (pipelined, double-buffered)
            resident((Cin, Cout)),      # W          (resident, single-buffered)
            resident((Ccond, Cout)),    # W_emb      (resident, single-buffered)
            resident((4, Cout)),        # [b, b_emb, gamma, beta]
        ],
        out_specs=stream((TM, Cout)),
        compiler_params=pltpu.CompilerParams(
            dimension_semantics=("parallel",),
            vmem_limit_bytes=int(budget)),
        cost_estimate=pl.CostEstimate(
            flops=int(flops), transcendentals=int(transcendentals),
            bytes_accessed=int(bytes_accessed)),
    )(x, cond, prep["w"], prep["w_emb"], prep["pvec"])

    return out


# ----------------------------------------------------------------------------- init / reference

def init_params(key, in_channels, out_channels, cond_channels):
    """Deterministic Kaiming-normal init (nonlinearity='relu', matching the silu branch)."""
    k_w, k_b, k_we, k_be = jax.random.split(key, 4)
    w = jax.random.normal(k_w, (in_channels, out_channels), jnp.float32) \
        * math.sqrt(2.0 / in_channels)                       # stored as (Cin, Cout) = W^T
    w_emb = jax.random.normal(k_we, (cond_channels, out_channels), jnp.float32) \
        * math.sqrt(2.0 / cond_channels)
    b = jax.random.uniform(k_b, (1, out_channels), jnp.float32,
                           -1.0 / math.sqrt(in_channels), 1.0 / math.sqrt(in_channels))
    b_emb = jax.random.uniform(k_be, (1, out_channels), jnp.float32,
                               -1.0 / math.sqrt(cond_channels), 1.0 / math.sqrt(cond_channels))
    gamma = jnp.ones((1, out_channels), jnp.float32)         # nn.LayerNorm defaults
    beta = jnp.zeros((1, out_channels), jnp.float32)
    return {"w": w, "b": b, "w_emb": w_emb, "b_emb": b_emb,
            "gamma": gamma, "beta": beta}


def reference(x, cond, params, *, condition_bias=1.0, eps=1e-5):
    """Pure-JAX reference mirroring the PyTorch forward (bf16 matmul operands, f32 math)."""
    bf = jnp.bfloat16
    h = x.astype(bf).astype(jnp.float32) @ params["w"].astype(bf).astype(jnp.float32)
    h = h + params["b"]
    s = cond.astype(bf)
    s = (s * jax.nn.sigmoid(s)).astype(bf).astype(jnp.float32)
    c = s @ params["w_emb"].astype(bf).astype(jnp.float32) + params["b_emb"]
    h = h * (condition_bias + c)
    mean = jnp.mean(h, axis=-1, keepdims=True)
    var = jnp.mean((h - mean) ** 2, axis=-1, keepdims=True)
    h = (h - mean) * jax.lax.rsqrt(var + eps) * params["gamma"] + params["beta"]
    return h * jax.nn.sigmoid(h)


if __name__ == "__main__":
    # Small shapes consistent with the module's (batch, channels) MLP interface.
    B, Cin, Cout, Ccond = 8, 32, 32, 16
    key = jax.random.PRNGKey(0)
    kx, kc, kp = jax.random.split(key, 3)

    x = jax.random.normal(kx, (B, Cin), jnp.float32)
    cond = jax.random.normal(kc, (B, Ccond), jnp.float32)
    params = init_params(kp, Cin, Cout, Ccond)
    prep = prepare_params(params)       # one-time: bf16 weights + packed (4, Cout) params

    out = jax.block_until_ready(mlp_ln_act(x, cond, prep, condition_bias=1.0))
    ref = reference(x, cond, params, condition_bias=1.0)

    assert out.shape == (B, Cout), out.shape
    out32 = out.astype(jnp.float32)
    err = float(jnp.max(jnp.abs(out32 - ref)))
    assert jnp.allclose(out32, ref, atol=3e-2, rtol=3e-2), f"max abs err {err}"

    # TODO(synk): dropout with p>0 (training-mode RNG masking) not implemented;
    # the module here is instantiated with dropout=0 -> Identity, matching this kernel.
    print("KERNEL_OK")
</pallas_src>

<mosaic_0001>
module attributes {stable_mosaic.version = 11 : i64} {
  func.func @_mlp_ln_act_kernel(%arg0: i32, %arg1: memref<8x32xf32, #tpu.memory_space<vmem>>, %arg2: memref<8x16xf32, #tpu.memory_space<vmem>>, %arg3: memref<32x32xbf16, #tpu.memory_space<vmem>>, %arg4: memref<16x32xbf16, #tpu.memory_space<vmem>>, %arg5: memref<4x32xf32, #tpu.memory_space<vmem>>, %arg6: memref<8x32xbf16, #tpu.memory_space<vmem>>) attributes {dimension_semantics = [#tpu.dimension_semantics<parallel>], iteration_bounds = array<i64: 1>, scalar_prefetch = 0 : i64, scratch_operands = 0 : i64, tpu.core_type = #tpu.core_type<tc>, window_params = [{transform_indices = @transform_0, window_bounds = array<i64: 8, 32>}, {transform_indices = @transform_1, window_bounds = array<i64: 8, 16>}, {pipeline_mode = #tpu.pipeline_mode<synchronous>, transform_indices = @transform_2, window_bounds = array<i64: 32, 32>}, {pipeline_mode = #tpu.pipeline_mode<synchronous>, transform_indices = @transform_3, window_bounds = array<i64: 16, 32>}, {pipeline_mode = #tpu.pipeline_mode<synchronous>, transform_indices = @transform_4, window_bounds = array<i64: 4, 32>}, {transform_indices = @transform_5, window_bounds = array<i64: 8, 32>}]} {
    %c0 = arith.constant 0 : index
    %c0_0 = arith.constant 0 : index
    %0 = vector.load %arg2[%c0, %c0_0] : memref<8x16xf32, #tpu.memory_space<vmem>>, vector<8x16xf32>
    %1 = arith.truncf %0 : vector<8x16xf32> to vector<8x16xbf16>
    %2 = arith.negf %1 : vector<8x16xbf16>
    %3 = math.exp %2 : vector<8x16xbf16>
    %cst = arith.constant 1.000000e+00 : bf16
    %4 = vector.broadcast %cst : bf16 to vector<8x16xbf16>
    %5 = arith.addf %4, %3 : vector<8x16xbf16>
    %6 = arith.divf %4, %5 : vector<8x16xbf16>
    %7 = arith.mulf %1, %6 : vector<8x16xbf16>
    %c0_1 = arith.constant 0 : index
    %c0_2 = arith.constant 0 : index
    %8 = vector.load %arg4[%c0_1, %c0_2] : memref<16x32xbf16, #tpu.memory_space<vmem>>, vector<16x32xbf16>
    %cst_3 = arith.constant dense<0.000000e+00> : vector<8x32xf32>
    %9 = tpu.matmul %7, %8, %cst_3 {dimension_numbers = #tpu.dot_dimension_numbers<[1], [0], [0], [1], [0, 0, 1, 1], [], []>} : vector<8x16xbf16>, vector<16x32xbf16>, vector<8x32xf32> -> vector<8x32xf32>
    %c0_4 = arith.constant 0 : index
    %c0_5 = arith.constant 0 : index
    %10 = vector.load %arg1[%c0_4, %c0_5] : memref<8x32xf32, #tpu.memory_space<vmem>>, vector<8x32xf32>
    %11 = arith.truncf %10 : vector<8x32xf32> to vector<8x32xbf16>
    %c0_6 = arith.constant 0 : index
    %c0_7 = arith.constant 0 : index
    %12 = vector.load %arg3[%c0_6, %c0_7] : memref<32x32xbf16, #tpu.memory_space<vmem>>, vector<32x32xbf16>
    %cst_8 = arith.constant dense<0.000000e+00> : vector<8x32xf32>
    %13 = tpu.matmul %11, %12, %cst_8 {dimension_numbers = #tpu.dot_dimension_numbers<[1], [0], [0], [1], [0, 0, 1, 1], [], []>} : vector<8x32xbf16>, vector<32x32xbf16>, vector<8x32xf32> -> vector<8x32xf32>
    %c0_9 = arith.constant 0 : index
    %c0_10 = arith.constant 0 : index
    %14 = vector.load %arg5[%c0_9, %c0_10] : memref<4x32xf32, #tpu.memory_space<vmem>>, vector<4x32xf32>
    %15 = vector.extract_strided_slice %14 {offsets = [0, 0], sizes = [1, 32], strides = [1, 1]} : vector<4x32xf32> to vector<1x32xf32>
    %16 = vector.extract_strided_slice %14 {offsets = [1, 0], sizes = [1, 32], strides = [1, 1]} : vector<4x32xf32> to vector<1x32xf32>
    %17 = vector.extract_strided_slice %14 {offsets = [2, 0], sizes = [1, 32], strides = [1, 1]} : vector<4x32xf32> to vector<1x32xf32>
    %18 = vector.extract_strided_slice %14 {offsets = [3, 0], sizes = [1, 32], strides = [1, 1]} : vector<4x32xf32> to vector<1x32xf32>
    %19 = vector.broadcast %15 : vector<1x32xf32> to vector<8x32xf32>
    %20 = arith.addf %13, %19 : vector<8x32xf32>
    %21 = vector.broadcast %16 : vector<1x32xf32> to vector<8x32xf32>
    %22 = arith.addf %9, %21 : vector<8x32xf32>
    %cst_11 = arith.constant 1.000000e+00 : f32
    %23 = vector.broadcast %cst_11 : f32 to vector<8x32xf32>
    %24 = arith.addf %23, %22 : vector<8x32xf32>
    %25 = arith.mulf %20, %24 : vector<8x32xf32>
    %cst_12 = arith.constant dense<0.000000e+00> : vector<8xf32>
    %26 = vector.multi_reduction <add>, %25, %cst_12 [1] : vector<8x32xf32> to vector<8xf32>
    %27 = vector.shape_cast %26 : vector<8xf32> to vector<8x1xf32>
    %cst_13 = arith.constant 3.125000e-02 : f32
    %28 = vector.broadcast %cst_13 : f32 to vector<8x1xf32>
    %29 = arith.mulf %27, %28 : vector<8x1xf32>
    %30 = arith.mulf %25, %25 : vector<8x32xf32>
    %cst_14 = arith.constant dense<0.000000e+00> : vector<8xf32>
    %31 = vector.multi_reduction <add>, %30, %cst_14 [1] : vector<8x32xf32> to vector<8xf32>
    %32 = vector.shape_cast %31 : vector<8xf32> to vector<8x1xf32>
    %cst_15 = arith.constant 3.125000e-02 : f32
    %33 = vector.broadcast %cst_15 : f32 to vector<8x1xf32>
    %34 = arith.mulf %32, %33 : vector<8x1xf32>
    %35 = arith.mulf %29, %29 : vector<8x1xf32>
    %36 = arith.subf %34, %35 : vector<8x1xf32>
    %cst_16 = arith.constant 9.99999974E-6 : f32
    %37 = vector.broadcast %cst_16 : f32 to vector<8x1xf32>
    %38 = arith.addf %36, %37 : vector<8x1xf32>
    %39 = math.rsqrt %38 : vector<8x1xf32>
    %40 = vector.broadcast %17 : vector<1x32xf32> to vector<8x32xf32>
    %41 = vector.broadcast %39 : vector<8x1xf32> to vector<8x32xf32>
    %42 = arith.mulf %40, %41 : vector<8x32xf32>
    %43 = vector.broadcast %29 : vector<8x1xf32> to vector<8x32xf32>
    %44 = arith.mulf %43, %42 : vector<8x32xf32>
    %45 = vector.broadcast %18 : vector<1x32xf32> to vector<8x32xf32>
    %46 = arith.subf %45, %44 : vector<8x32xf32>
    %47 = arith.mulf %25, %42 : vector<8x32xf32>
    %48 = arith.addf %47, %46 : vector<8x32xf32>
    %49 = arith.truncf %48 : vector<8x32xf32> to vector<8x32xbf16>
    %50 = arith.negf %49 : vector<8x32xbf16>
    %51 = math.exp %50 : vector<8x32xbf16>
    %cst_17 = arith.constant 1.000000e+00 : bf16
    %52 = vector.broadcast %cst_17 : bf16 to vector<8x32xbf16>
    %53 = arith.addf %52, %51 : vector<8x32xbf16>
    %54 = arith.divf %52, %53 : vector<8x32xbf16>
    %55 = arith.mulf %49, %54 : vector<8x32xbf16>
    %c0_18 = arith.constant 0 : index
    %c0_19 = arith.constant 0 : index
    %56 = vector.load %arg6[%c0_18, %c0_19] : memref<8x32xbf16, #tpu.memory_space<vmem>>, vector<8x32xbf16>
    tpu.vector_store %arg6[%c0_18, %c0_19], %55 {strides = array<i32>} : memref<8x32xbf16, #tpu.memory_space<vmem>>, vector<8x32xbf16>,
    return
  }
  func.func @transform_0(%arg0: i32) -> (i32, i32) {
    %c0_i32 = arith.constant 0 : i32
    %c0_i32_0 = arith.constant 0 : i32
    return %arg0, %c0_i32 : i32, i32
  }
  func.func @transform_1(%arg0: i32) -> (i32, i32) {
    %c0_i32 = arith.constant 0 : i32
    %c0_i32_0 = arith.constant 0 : i32
    return %arg0, %c0_i32 : i32, i32
  }
  func.func @transform_2(%arg0: i32) -> (i32, i32) {
    %c0_i32 = arith.constant 0 : i32
    %c0_i32_0 = arith.constant 0 : i32
    %c0_i32_1 = arith.constant 0 : i32
    return %c0_i32, %c0_i32_0 : i32, i32
  }
  func.func @transform_3(%arg0: i32) -> (i32, i32) {
    %c0_i32 = arith.constant 0 : i32
    %c0_i32_0 = arith.constant 0 : i32
    %c0_i32_1 = arith.constant 0 : i32
    return %c0_i32, %c0_i32_0 : i32, i32
  }
  func.func @transform_4(%arg0: i32) -> (i32, i32) {
    %c0_i32 = arith.constant 0 : i32
    %c0_i32_0 = arith.constant 0 : i32
    %c0_i32_1 = arith.constant 0 : i32
    return %c0_i32, %c0_i32_0 : i32, i32
  }
  func.func @transform_5(%arg0: i32) -> (i32, i32) {
    %c0_i32 = arith.constant 0 : i32
    %c0_i32_0 = arith.constant 0 : i32
    return %arg0, %c0_i32 : i32, i32
  }
}

</mosaic_0001>

<bundles_post_ra>
// kernel: tpu_custom_call.1
= control target key start
LH: loop header
LB: loop body
LE: loop exit
PB: predicated region body
PF: predicated region fallthrough
CT: control target
= control target key end

     0   :  { %10 = vsyncpa [#allocation3], 0  ;;  %s484_s0 = inlined_call_operand.hbm [shape: f32[8,32], index: 0, kind: input, shape index: {}]   ;;  %s485_s1 = inlined_call_operand.hbm [shape: f32[8,16], index: 1, kind: input, shape index: {}]   ;;  %s486_s2 = inlined_call_operand.hbm [shape: bf16[32,32], index: 2, kind: input, shape index: {}]   ;;  %s487_s3 = inlined_call_operand.vmem [shape: bf16[16,32], index: 3, kind: input, shape index: {}]   ;;  %s488_s4 = inlined_call_operand.vmem [shape: f32[4,32], index: 4, kind: input, shape index: {}]   ;;  %s489_s5 = inlined_call_operand.hbm [shape: bf16[8,32], index: 5, kind: output, shape index: {}]  }
   0x1   :  { %11 = vsyncpa [#allocation6], 0 }
   0x2   :  { %12 = vsyncpa [#allocation4], 0  ;;  %s389_s18 = smov [#allocation5]   ;;  %s390_s20 = smov [#allocation2]  }
   0x3   :  { %s29_s19 = sshll.u32 %s389_s18, 4  ;;  %s19_s21 = sshll.u32 %s390_s20, 4  ;;  %s30_s19 = int_to_ptr.vmem [resolvable:$true] %s29_s19  ;;  %s20_s21 = int_to_ptr.vmem [resolvable:$true] %s19_s21 }
   0x4   :  { %s295_s24 = scalar_lea.hbm %s485_s1, 128 }
   0x5   :  { %p296_p0 = scmp.ne.s32.totalorder %s485_s1, %s295_s24  ;;  %p299_p1 = scmp.lt.u32.totalorder %s295_s24, %s485_s1 }
   0x7   :  { %p301_p2 = pnand %p299_p1, %p296_p0 }
   0x9   :  { %304 = shalt.err (!%p301_p2)
}
   0xa   :  { %s305_s29 = scalar_lea.vmem %s30_s19, 128  ;;  %p310_p4 = scmp.lt.s32.totalorder %s30_s19, %s30_s19 }
   0xb   :  { %p306_p3 = scmp.ne.s32.totalorder %s30_s19, %s305_s29  ;;  %p311_p5 = scmp.lt.s32.totalorder %s305_s29, %s305_s29 }
   0xd   :  { %p312_p6 = por %p311_p5, %p310_p4 }
   0xf   :  { %p313_p7 = pnand %p312_p6, %p306_p3 }
  0x11   :  { %316 = shalt.err (!%p313_p7)
}
  0x12   :  { %32 = dma.hbm_to_vmem [thread:$0]  %s485_s1, 128, %s30_s19, [#allocation6]  }
  0x13   :  { %s317_s9 = scalar_lea.hbm %s484_s0, 128 }
  0x14   :  { %p318_p8 = scmp.ne.s32.totalorder %s484_s0, %s317_s9  ;;  %p321_p9 = scmp.lt.u32.totalorder %s317_s9, %s484_s0 }
  0x16   :  { %p323_p10 = pnand %p321_p9, %p318_p8 }
  0x18   :  { %326 = shalt.err (!%p323_p10)
}
  0x19   :  { %s327_s14 = scalar_lea.vmem %s20_s21, 128  ;;  %p332_p12 = scmp.lt.s32.totalorder %s20_s21, %s20_s21 }
  0x1a   :  { %p328_p11 = scmp.ne.s32.totalorder %s20_s21, %s327_s14  ;;  %p333_p13 = scmp.lt.s32.totalorder %s327_s14, %s327_s14 }
  0x1c   :  { %p334_p0 = por %p333_p13, %p332_p12 }
  0x1e   :  { %p335_p1 = pnand %p334_p0, %p328_p11 }
  0x20   :  { %338 = shalt.err (!%p335_p1)
}
  0x21   :  { %22 = dma.hbm_to_vmem [thread:$0]  %s484_s0, 128, %s20_s21, [#allocation3]  }
  0x22   :  { %s391_s16 = smov [#allocation7]   ;;  %s339_s20 = scalar_lea.hbm %s486_s2, 256 }
  0x23   :  { %s38_s17 = sshll.u32 %s391_s16, 4  ;;  %p340_p2 = scmp.ne.s32.totalorder %s486_s2, %s339_s20  ;;  %s39_s17 = int_to_ptr.vmem [resolvable:$true] %s38_s17 }
  0x24   :  { %p343_p3 = scmp.lt.u32.totalorder %s339_s20, %s486_s2 }
  0x26   :  { %p345_p4 = pnand %p343_p3, %p340_p2 }
  0x28   :  { %348 = shalt.err (!%p345_p4)
}
  0x29   :  { %s349_s26 = scalar_lea.vmem %s39_s17, 256  ;;  %p354_p6 = scmp.lt.s32.totalorder %s39_s17, %s39_s17 }
  0x2a   :  { %p350_p5 = scmp.ne.s32.totalorder %s39_s17, %s349_s26  ;;  %p355_p7 = scmp.lt.s32.totalorder %s349_s26, %s349_s26 }
  0x2c   :  { %p356_p8 = por %p355_p7, %p354_p6 }
  0x2e   :  { %p357_p9 = pnand %p356_p8, %p350_p5 }
  0x30   :  { %360 = shalt.err (!%p357_p9)
}
  0x31   :  { %s392_s0 = smov 64   ;;  %s393_s21 = smov 4  }
  0x32   :  { %44 = dma.hbm_to_vmem [thread:$0]  %s486_s2, 256, %s39_s17, [#allocation6], %s392_s0, %s392_s0, %s393_s21  }
  0x33   :  { %383 = dma.done.wait [#allocation3], 128  }
  0x34   :  { %384 = vsyncadd [#allocation3], 4294967168 }
  0x35   :  { %385 = dma.done.wait [#allocation6], 384  }
  0x36   :  { %386 = vsyncadd [#allocation6], 4294966912  ;;  %v394_v0 = vmov 0.0   ;;  %vm395_vm0 = vmmov 0   ;;  %v282_v1 = vld [vmem:[#allocation7] sm:$0xff]   ;;  %v283_v2 = vld [vmem:[#allocation7 + $0x8] sm:$0xff]   ;;  %v79_v18 = vlaneseq }
  0x37   :  { %260 = vmatprep.subr.bf16.mxu0 %v394_v0  ;;  %268 = vmatprep.subr.bf16.mxu1 %v394_v0  ;;  %v284_v3 = vld [vmem:[%s487_s3] sm:$0xff]   ;;  %v60_v5 = vld [vmem:[#allocation5] sm:$0xff]  ;;  %vm95_vm1 = vcmask 261120   ;;  %vm149_vm2 = vcmask 130048   ;;  %vm230_vm3 = vcmask 257024  }
  0x38   :  { %264 = vmatprep.mubr.msk.bf16.mxu0 %vm395_vm0, %v394_v0  ;;  %270 = vmatprep.mubr.msk.bf16.mxu1 %vm395_vm0, %v394_v0  ;;  %v72_v4 = vld [vmem:[#allocation2] sm:$0xff]  ;;  %v61_v6 = vpack.c.bf16 %v60_v5, %v60_v5  ;;  %v80_v19 = vshrl.u32 %v79_v18, 7 }
  0x39   :  { %261 = vmatpush3.bf16.msra.mxu0 %v282_v1  ;;  %269 = vmatpush3.bf16.msra.mxu1 %v284_v3  ;;  %v73_v7 = vpack.c.bf16 %v72_v4, %v72_v4  ;;  %v78_v22 = vld [vmem:[%s488_s4] sm:$0xf]  ;;  %s396_s4 = smov [#allocation8]  }
  0x3a   :  { %262 = vmatprep.subr.bf16.mxu0 %v394_v0  ;;  %v248_v8 = vmul.bf16 3216621497, %v61_v6  ;;  %v81_v20 = vsub.s32 0, %v80_v19  ;;  %v141_v21 = vsub.s32 1, %v80_v19  ;;  %v210_v43 = vsub.s32 2, %v80_v19  ;;  %s238_s6 = sshll.u32 %s396_s4, 4  ;;  %s239_s6 = int_to_ptr.vmem [resolvable:$true] %s238_s6 }
  0x3b   :  { %v216_v45 = vsub.s32 3, %v80_v19  ;;  %s361_s7 = scalar_lea.vmem %s239_s6, 64  ;;  %p366_p11 = scmp.lt.s32.totalorder %s239_s6, %s239_s6 }
  0x3c   :  { %285 = vpow.bf16 %v248_v8  ;;  %v82_v23 = vrot.slane %v78_v22, %v81_v20  ;;  %v142_v24 = vrot.slane %v78_v22, %v141_v21  ;;  %v211_v44 = vrot.slane %v78_v22, %v210_v43  ;;  %p362_p10 = scmp.ne.s32.totalorder %s239_s6, %s361_s7  ;;  %p367_p12 = scmp.lt.s32.totalorder %s361_s7, %s361_s7 }
  0x3d   :  { %263 = vmatpush3.bf16.msra.mxu0 %v283_v2  ;;  %v217_v47 = vrot.slane %v78_v22, %v216_v45 }
  0x3e   :  { %p368_p13 = por %p367_p12, %p366_p11 }
  0x40   :  { %265 = vmatmul.mubr.msk.bf16.vlgmr.msra.gmra.mrb[0].mxu0 %vm95_vm1, %v73_v7  ;;  %p369_p0 = pnand %p368_p13, %p362_p10 }
  0x47   :  { %v286_v9 = vpop.eup %285 }
  0x48   :  { %v66_v10 = vadd.bf16 1065369472, %v286_v9 }
  0x4a   :  { %287 = vrcp.bf16 %v66_v10 }
  0x55   :  { %v288_v11 = vpop.eup %287 }
  0x56   :  { %v68_v12 = vmul.bf16 1065369472, %v288_v11 }
  0x58   :  { %v69_v13 = vmul.bf16 %v68_v12, %v61_v6 }
  0x5a   :  { %271 = vmatmul.mubr.msk.bf16.vlgmr.msra.gmra.mrb[0].mxu1 %vm149_vm2, %v69_v13 }
 0x113   :  { %v133_v14 = vpop.f32.mrb[0].mxu0 }
 0x114   :  { %v266_v15 = vpop.f32.mrb[1].mxu0  ;;  %v134_v26 = vadd.f32 %v133_v14, %v82_v23 }
 0x115   :  { %v136_v16 = vpop.f32.mrb[2].mxu0 }
 0x116   :  { %v267_v17 = vpop.f32.mrb[3].mxu0 }
 0x12d   :  { %v187_v25 = vpop.f32.mrb[0].mxu1 }
 0x12e   :  { %v188_v27 = vadd.f32 %v187_v25, %v142_v24  ;;  %v272_v28 = vpop.f32.mrb[1].mxu1 }
 0x12f   :  { %v190_v29 = vpop.f32.mrb[2].mxu1 }
 0x130   :  { %v193_v30 = vadd.f32 1.0, %v188_v27  ;;  %v273_v31 = vpop.f32.mrb[3].mxu1 }
 0x132   :  { %v194_v32 = vmul.f32 %v193_v30, %v134_v26 }
 0x134   :  { %v195_v33 = vsel %vm95_vm1, %v194_v32, 0.0  ;;  %v199_v34 = vmul.f32 %v194_v32, %v194_v32 }
 0x135   :  { %196 = vadd.xlane.f32.xlu0 %v195_v33 }
 0x136   :  { %v200_v35 = vsel %vm95_vm1, %v199_v34, 0.0 }
 0x139   :  { %201 = vadd.xlane.f32.xlu0 %v200_v35 }
 0x1c2   :  { %v197_v36 = vpop.xlane.xlu0 %196 }
 0x1c3   :  { %v198_v37 = vmul.f32 0.03125, %v197_v36 }
 0x1c5   :  { %v204_v39 = vmul.f32 %v198_v37, %v198_v37 }
 0x1c6   :  { %v202_v38 = vpop.xlane.xlu0 %201 }
 0x1c7   :  { %v203_v40 = vmul.f32 0.03125, %v202_v38 }
 0x1c9   :  { %v205_v41 = vsub.f32 %v203_v40, %v204_v39 }
 0x1cb   :  { %v206_v42 = vadd.f32 1e-05, %v205_v41 }
 0x1cd   :  { %289 = vrsqrt.f32 %v206_v42 }
 0x1d7   :  { %v290_v46 = vpop.eup %289 }
 0x1d8   :  { %v212_v48 = vmul.f32 %v290_v46, %v211_v44 }
 0x1da   :  { %v213_v49 = vmul.f32 %v212_v48, %v198_v37  ;;  %v219_v51 = vmul.f32 %v212_v48, %v194_v32 }
 0x1dc   :  { %v218_v50 = vsub.f32 %v217_v47, %v213_v49 }
 0x1de   :  { %v220_v52 = vadd.f32 %v219_v51, %v218_v50 }
 0x1e0   :  { %v221_v53 = vpack.c.bf16 %v220_v52, %v220_v52 }
 0x1e2   :  { %v254_v54 = vmul.bf16 3216621497, %v221_v53 }
 0x1e4   :  { %291 = vpow.bf16 %v254_v54 }
 0x1ef   :  { %v292_v55 = vpop.eup %291 }
 0x1f0   :  { %v226_v56 = vadd.bf16 1065369472, %v292_v55 }
 0x1f2   :  { %293 = vrcp.bf16 %v226_v56 }
 0x1fd   :  { %v294_v57 = vpop.eup %293 }
 0x1fe   :  { %v228_v58 = vmul.bf16 1065369472, %v294_v57 }
 0x200   :  { %v229_v59 = vmul.bf16 %v228_v58, %v221_v53 }
 0x202   :  { %231 = vst.msk [vmem:[#allocation8] sm:$0xf] %vm230_vm3, %v229_v59 }
 0x203   :  { %372 = shalt.err (!%p369_p0)
}
 0x204   :  { %s373_s10 = scalar_lea.hbm %s489_s5, 64 }
 0x205   :  { %p374_p1 = scmp.ne.s32.totalorder %s489_s5, %s373_s10  ;;  %p377_p2 = scmp.lt.u32.totalorder %s373_s10, %s489_s5 }
 0x207   :  { %p379_p3 = pnand %p377_p2, %p374_p1 }
 0x209   :  { %382 = shalt.err (!%p379_p3)
}
 0x20a   :  { %241 = dma.vmem_to_hbm [thread:$0]  %s239_s6, 64, %s489_s5, [#allocation4]  }
 0x20b   :  { %387 = dma.done.wait [#allocation4], 64  }
 0x20c   :  { %388 = vsyncadd [#allocation4], 4294967232 }
 0x20d   :  { %245 = vsyncpa [#allocation3], 1 }
 0x20e   :  { %246 = vsyncpa [#allocation6], 1 }
 0x20f   :  { %247 = vsyncpa [#allocation4], 1 }

</bundles_post_ra>
